<compile_context>
chip_gen: v7x
topology: tpu7x:2x2x1
jax: 0.10.0
libtpu: 0.0.40
codegen_flags: <defaults>
</compile_context>

<pallas_src>
import jax
import jax.numpy as jnp
from jax.experimental import pallas as pl
from jax.experimental.pallas import tpu as pltpu


def _round_up(n, m):
    return (n + m - 1) // m * m


def _vmem_budget_bytes():
    """Per-generation VMEM budget (leave headroom for compiler scratch)."""
    try:
        cap = int(getattr(pltpu.get_tpu_info(), "vmem_capacity_bytes"))
    except Exception:  # unknown chip / interpret mode
        cap = 64 * 1024 * 1024
    # 3/4 of physical, capped at 96 MiB (v7x -> 48 MiB, v5e/v6e -> 96 MiB).
    return min(cap * 3 // 4, 96 * 1024 * 1024)


def _make_kernel(scale, last, single_k, compute_dtype):
    if single_k:
        def kernel(*refs):
            if last:
                x_ref, w_ref, o_ref = refs
                b_ref = None
            else:
                x_ref, w_ref, b_ref, o_ref = refs
            acc = jnp.dot(
                x_ref[...].astype(compute_dtype), w_ref[...],
                preferred_element_type=jnp.float32,
            ) * scale
            if not last:
                acc = jnp.maximum(acc + b_ref[...].astype(jnp.float32), 0.0)
            o_ref[...] = acc.astype(o_ref.dtype)
        return kernel

    def kernel(*refs):
        if last:
            x_ref, w_ref, o_ref, acc_ref = refs
            b_ref = None
        else:
            x_ref, w_ref, b_ref, o_ref, acc_ref = refs

        k = pl.program_id(2)

        @pl.when(k == 0)
        def _init():
            acc_ref[...] = jnp.zeros_like(acc_ref)

        # Hot loop: pure MXU matmul-accumulate (f32 accumulation); the per-tile
        # activation cast is VPU work hidden under the MXU.
        acc_ref[...] += jnp.dot(
            x_ref[...].astype(compute_dtype), w_ref[...],
            preferred_element_type=jnp.float32,
        )

        # Epilogue once per output tile (last K step): scale, bias, relu.
        @pl.when(k == pl.num_programs(2) - 1)
        def _finalize():
            acc = acc_ref[...] * scale
            if not last:
                acc = jnp.maximum(acc + b_ref[...].astype(jnp.float32), 0.0)
            o_ref[...] = acc.astype(o_ref.dtype)

    return kernel


class DenseBlock:
    """Pallas equivalent of the PyTorch DenseBlock.

    Parameter cast + padding is done ONCE here (hoisted out of the forward
    pass); __call__ only touches the activations.
    """

    def __init__(self, w, b, last=False, *, compute_dtype=jnp.bfloat16,
                 out_dtype=jnp.float32, max_tk=None, max_tn=None):
        D, h = w.shape
        self.D, self.h = D, h
        self.last = bool(last)
        self.compute_dtype = jnp.dtype(compute_dtype)
        self.out_dtype = jnp.dtype(out_dtype)
        self.scale = (1.0 / float(D)) if self.last else (1.0 / float(D) ** 0.5)

        budget = _vmem_budget_bytes()
        self.vmem_limit = budget

        csize = self.compute_dtype.itemsize
        osize = self.out_dtype.itemsize
        tm_est = 256  # conservative M tile for the budget calculation

        # --- N tile: keep the full (unpadded) h when it fits; only very wide
        # --- outputs get lane-aligned chunks.
        tn_cap = int(max_tn) if max_tn is not None else 1024
        if h <= tn_cap:
            tn = h                      # block dim == full dim: always legal
        else:
            tn = max(128, (tn_cap // 128) * 128)

        # --- K tile: whole reduction in one step when it fits the budget,
        # --- otherwise 128-aligned chunks (capped at 2048).
        tk_cap = int(max_tk) if max_tk is not None else 2048
        tk = D if D <= tk_cap else max(128, (tk_cap // 128) * 128)

        def usage(tk_):
            nk = -(-D // tk_)
            acc_bytes = tm_est * tn * 4 if nk > 1 else 0
            return (2 * (tm_est * tk_ + tk_ * tn) * csize
                    + 2 * tm_est * tn * osize + acc_bytes)

        while tk > 128 and usage(tk) > budget:
            tk = max(128, ((tk // 2) // 128) * 128)

        self.tk, self.tn = tk, tn
        self.Dp = _round_up(D, tk)
        self.hp = _round_up(h, tn)
        self.num_k = self.Dp // tk

        # Hoisted, one-time parameter preparation (cast + pad).
        wp = w.astype(self.compute_dtype)
        if self.Dp != D or self.hp != h:
            wp = jnp.pad(wp, ((0, self.Dp - D), (0, self.hp - h)))
        self.wp = wp
        if self.last:
            self.b2d = None
        else:
            b2d = b.astype(jnp.float32).reshape(1, h)
            if self.hp != h:
                b2d = jnp.pad(b2d, ((0, 0), (0, self.hp - h)))
            self.b2d = b2d

    def __call__(self, x):
        B = x.shape[0]
        x2d = x.reshape(B, -1)          # torch.flatten(x, start_dim=1)
        assert x2d.shape[1] == self.D, "flattened input_dim mismatch"

        # M tile: full batch as one block when small (legal without alignment
        # since block dim == array dim); otherwise 256-row tiles (mult. of 16).
        tm = B if B <= 512 else 256
        Bp = _round_up(B, tm)

        # Activation padding only when the tiles don't divide the shape (the
        # kernel casts each x tile on-chip, so no wrapper-side dtype pass).
        if Bp != B or self.Dp != self.D:
            x2d = jnp.pad(x2d, ((0, Bp - B), (0, self.Dp - self.D)))

        tk, tn, hp, num_k = self.tk, self.tn, self.hp, self.num_k
        single_k = num_k == 1

        if single_k:
            grid = (Bp // tm, hp // tn)
            in_specs = [
                pl.BlockSpec((tm, tk), lambda i, j: (i, 0)),   # x tile
                pl.BlockSpec((tk, tn), lambda i, j: (0, j)),   # w tile
            ]
            bias_spec = pl.BlockSpec((1, tn), lambda i, j: (0, j))
            out_spec = pl.BlockSpec((tm, tn), lambda i, j: (i, j))
            scratch = []
            dims = ("parallel", "parallel")
        else:
            grid = (Bp // tm, hp // tn, num_k)
            in_specs = [
                pl.BlockSpec((tm, tk), lambda i, j, k: (i, k)),
                pl.BlockSpec((tk, tn), lambda i, j, k: (k, j)),
            ]
            bias_spec = pl.BlockSpec((1, tn), lambda i, j, k: (0, j))
            out_spec = pl.BlockSpec((tm, tn), lambda i, j, k: (i, j))
            scratch = [pltpu.VMEM((tm, tn), jnp.float32)]
            dims = ("parallel", "parallel", "arbitrary")

        args = [x2d, self.wp]
        if not self.last:
            in_specs.append(bias_spec)
            args.append(self.b2d)

        xsize = jnp.dtype(x2d.dtype).itemsize
        cost = pl.CostEstimate(
            flops=2 * Bp * self.Dp * hp,
            bytes_accessed=(Bp * self.Dp * xsize
                            + self.Dp * hp * self.compute_dtype.itemsize
                            + Bp * hp * self.out_dtype.itemsize
                            + (0 if self.last else hp * 4)),
            transcendentals=0,
        )

        # NOTE(v7x): for tiny problems (parallel grid extent 1x1, as in the
        # demo) one TensorCore idles; realistic shapes produce >=2 parallel
        # output tiles so both cores get work.
        out = pl.pallas_call(
            _make_kernel(self.scale, self.last, single_k, self.compute_dtype),
            out_shape=jax.ShapeDtypeStruct((Bp, hp), self.out_dtype),
            grid_spec=pltpu.PrefetchScalarGridSpec(
                num_scalar_prefetch=0,
                grid=grid,
                in_specs=in_specs,
                out_specs=out_spec,
                scratch_shapes=scratch,
            ),
            compiler_params=pltpu.CompilerParams(
                dimension_semantics=dims,
                vmem_limit_bytes=self.vmem_limit,
            ),
            cost_estimate=cost,
        )(*args)

        if Bp != B or hp != self.h:
            out = out[:B, :self.h]
        return out


def _reference(x, w, b, *, last=False, compute_dtype=jnp.float32):
    # Reference with the same operand rounding as the kernel (f32 accumulate).
    x2d = x.reshape(x.shape[0], -1)
    d = x2d.shape[1]
    xf = x2d.astype(compute_dtype).astype(jnp.float32)
    wf = w.astype(compute_dtype).astype(jnp.float32)
    if last:
        return xf @ wf / d
    y = xf @ wf / (d ** 0.5) + b.astype(jnp.float32)
    return jnp.maximum(y, 0.0)


if __name__ == "__main__":
    key = jax.random.PRNGKey(0)
    kx, kw, kb, kx2, kw2, kb2 = jax.random.split(key, 6)

    # Shapes implied by the module: batch=2, channels=4, spatial=16, hidden=32.
    B, C, H, W = 2, 4, 16, 16
    input_dim = C * H * W          # 1024
    hidden = 32

    x = jax.random.normal(kx, (B, C, H, W), dtype=jnp.float32)
    w = jax.random.normal(kw, (input_dim, hidden), dtype=jnp.float32)
    b = jax.random.normal(kb, (hidden,), dtype=jnp.float32)

    # bf16 operands / f32 accumulation (fast path, params prepared once).
    blk = DenseBlock(w, b, last=False)
    y = blk(x)
    jax.block_until_ready(y)
    assert y.shape == (B, hidden)
    y_ref = _reference(x, w, b, last=False, compute_dtype=jnp.bfloat16)
    assert jnp.allclose(y, y_ref, atol=1e-2, rtol=1e-2), "mismatch (last=False, bf16)"

    blk_last = DenseBlock(w, b, last=True)
    y_last = blk_last(x)
    jax.block_until_ready(y_last)
    y_last_ref = _reference(x, w, b, last=True, compute_dtype=jnp.bfloat16)
    assert jnp.allclose(y_last, y_last_ref, atol=1e-2, rtol=1e-2), "mismatch (last=True, bf16)"

    # Full-f32 path matches the PyTorch semantics exactly.
    blk32 = DenseBlock(w, b, last=False, compute_dtype=jnp.float32)
    y32 = blk32(x)
    jax.block_until_ready(y32)
    y32_ref = _reference(x, w, b, last=False, compute_dtype=jnp.float32)
    assert jnp.allclose(y32, y32_ref, atol=1e-4, rtol=1e-4), "mismatch (last=False, f32)"

    # Stress the multi-K accumulator path + K/N padding with forced small
    # tiles (f32 operands for a tight comparison).
    B2, D2, h2 = 3, 1000, 160
    x2 = jax.random.normal(kx2, (B2, D2), dtype=jnp.float32)
    w2 = jax.random.normal(kw2, (D2, h2), dtype=jnp.float32)
    b2 = jax.random.normal(kb2, (h2,), dtype=jnp.float32)
    blk_multi = DenseBlock(w2, b2, last=False, compute_dtype=jnp.float32,
                           max_tk=256, max_tn=128)
    y2 = blk_multi(x2)
    jax.block_until_ready(y2)
    assert y2.shape == (B2, h2)
    y2_ref = _reference(x2, w2, b2, last=False, compute_dtype=jnp.float32)
    assert jnp.allclose(y2, y2_ref, atol=1e-3, rtol=1e-3), "mismatch (multi-K, padded)"

    print("KERNEL_OK")
</pallas_src>

<mosaic_0001>
module attributes {stable_mosaic.version = 11 : i64} {
  func.func @kernel(%arg0: i32, %arg1: i32, %arg2: memref<2x1024xf32, #tpu.memory_space<vmem>>, %arg3: memref<1024x32xbf16, #tpu.memory_space<vmem>>, %arg4: memref<1x32xf32, #tpu.memory_space<vmem>>, %arg5: memref<2x32xf32, #tpu.memory_space<vmem>>) attributes {dimension_semantics = [#tpu.dimension_semantics<parallel>, #tpu.dimension_semantics<parallel>], iteration_bounds = array<i64: 1, 1>, scalar_prefetch = 0 : i64, scratch_operands = 0 : i64, tpu.core_type = #tpu.core_type<tc>, window_params = [{transform_indices = @transform_0, window_bounds = array<i64: 2, 1024>}, {transform_indices = @transform_1, window_bounds = array<i64: 1024, 32>}, {transform_indices = @transform_2, window_bounds = array<i64: 1, 32>}, {transform_indices = @transform_3, window_bounds = array<i64: 2, 32>}]} {
    %c0 = arith.constant 0 : index
    %c0_0 = arith.constant 0 : index
    %0 = vector.load %arg2[%c0, %c0_0] : memref<2x1024xf32, #tpu.memory_space<vmem>>, vector<2x1024xf32>
    %1 = arith.truncf %0 : vector<2x1024xf32> to vector<2x1024xbf16>
    %c0_1 = arith.constant 0 : index
    %c0_2 = arith.constant 0 : index
    %2 = vector.load %arg3[%c0_1, %c0_2] : memref<1024x32xbf16, #tpu.memory_space<vmem>>, vector<1024x32xbf16>
    %cst = arith.constant dense<0.000000e+00> : vector<2x32xf32>
    %3 = tpu.matmul %1, %2, %cst {dimension_numbers = #tpu.dot_dimension_numbers<[1], [0], [0], [1], [0, 0, 1, 1], [], []>} : vector<2x1024xbf16>, vector<1024x32xbf16>, vector<2x32xf32> -> vector<2x32xf32>
    %cst_3 = arith.constant 3.125000e-02 : f32
    %4 = vector.broadcast %cst_3 : f32 to vector<2x32xf32>
    %5 = arith.mulf %3, %4 : vector<2x32xf32>
    %c0_4 = arith.constant 0 : index
    %c0_5 = arith.constant 0 : index
    %6 = vector.load %arg4[%c0_4, %c0_5] : memref<1x32xf32, #tpu.memory_space<vmem>>, vector<1x32xf32>
    %7 = vector.broadcast %6 : vector<1x32xf32> to vector<2x32xf32>
    %8 = arith.addf %5, %7 : vector<2x32xf32>
    %cst_6 = arith.constant 0.000000e+00 : f32
    %9 = vector.broadcast %cst_6 : f32 to vector<2x32xf32>
    %10 = arith.maximumf %8, %9 : vector<2x32xf32>
    %c0_7 = arith.constant 0 : index
    %c0_8 = arith.constant 0 : index
    %11 = vector.load %arg5[%c0_7, %c0_8] : memref<2x32xf32, #tpu.memory_space<vmem>>, vector<2x32xf32>
    tpu.vector_store %arg5[%c0_7, %c0_8], %10 {strides = array<i32>} : memref<2x32xf32, #tpu.memory_space<vmem>>, vector<2x32xf32>,
    return
  }
  func.func @transform_0(%arg0: i32, %arg1: i32) -> (i32, i32) {
    %c0_i32 = arith.constant 0 : i32
    %c0_i32_0 = arith.constant 0 : i32
    return %arg0, %c0_i32 : i32, i32
  }
  func.func @transform_1(%arg0: i32, %arg1: i32) -> (i32, i32) {
    %c0_i32 = arith.constant 0 : i32
    %c0_i32_0 = arith.constant 0 : i32
    return %c0_i32, %arg1 : i32, i32
  }
  func.func @transform_2(%arg0: i32, %arg1: i32) -> (i32, i32) {
    %c0_i32 = arith.constant 0 : i32
    %c0_i32_0 = arith.constant 0 : i32
    return %c0_i32, %arg1 : i32, i32
  }
  func.func @transform_3(%arg0: i32, %arg1: i32) -> (i32, i32) {
    %c0_i32 = arith.constant 0 : i32
    return %arg0, %arg1 : i32, i32
  }
}

</mosaic_0001>

<bundles_post_ra>
// kernel: tpu_custom_call.1
= control target key start
LH: loop header
LB: loop body
LE: loop exit
PB: predicated region body
PF: predicated region fallthrough
CT: control target
= control target key end

     0   :  { %v24_v28 = vlaneseq  ;;  %v1013_v36 = vmov 1983009808   ;;  %s1254_s0 = inlined_call_operand.vmem [shape: f32[2,1024], index: 0, kind: input, shape index: {}]   ;;  %s1255_s1 = inlined_call_operand.vmem [shape: bf16[1024,32], index: 1, kind: input, shape index: {}]   ;;  %s1256_s2 = inlined_call_operand.vmem [shape: f32[1,32], index: 2, kind: input, shape index: {}]   ;;  %s1257_s3 = inlined_call_operand.hbm [shape: f32[2,32], index: 3, kind: output, shape index: {}]  }
   0x1   :  { %v923_v0 = vld [vmem:[%s1255_s1 + $0x40] sm:$0xff]   ;;  %v927_v4 = vld [vmem:[%s1255_s1 + $0x48] sm:$0xff]   ;;  %v931_v8 = vld [vmem:[%s1255_s1 + $0x50] sm:$0xff]   ;;  %v22_v37 = vunpack.c.l.s4 %v1013_v36 }
   0x2   :  { %v924_v1 = vld [vmem:[%s1255_s1 + $0xc0] sm:$0xff]   ;;  %833 = vmatprep.subr.bf16.mxu0 %v923_v0  ;;  %v928_v5 = vld [vmem:[%s1255_s1 + $0xc8] sm:$0xff]   ;;  %v932_v9 = vld [vmem:[%s1255_s1 + $0xd0] sm:$0xff]   ;;  %v25_v33 = vshrl.u32 %v24_v28, 7 }
   0x3   :  { %v925_v2 = vld [vmem:[%s1255_s1] sm:$0xff]   ;;  %855 = vmatprep.subr.bf16.mxu1 %v924_v1  ;;  %v929_v6 = vld [vmem:[%s1255_s1 + $0x8] sm:$0xff]   ;;  %v933_v10 = vld [vmem:[%s1255_s1 + $0x10] sm:$0xff]   ;;  %v23_v39 = vunpack.c.0.s8 %v22_v37 }
   0x4   :  { %v926_v3 = vld [vmem:[%s1255_s1 + $0x80] sm:$0xff]   ;;  %834 = vmatpush3.bf16.msra.mxu0 %v925_v2  ;;  %v930_v7 = vld [vmem:[%s1255_s1 + $0x88] sm:$0xff]   ;;  %v934_v11 = vld [vmem:[%s1255_s1 + $0x90] sm:$0xff]  }
   0x5   :  { %856 = vmatpush3.bf16.msra.mxu1 %v926_v3  ;;  %835 = vmatprep.subr.bf16.mxu0 %v927_v4  ;;  %v935_v12 = vld [vmem:[%s1255_s1 + $0x58] sm:$0xff]   ;;  %v939_v16 = vld [vmem:[%s1255_s1 + $0x60] sm:$0xff]   ;;  %v943_v20 = vld [vmem:[%s1255_s1 + $0x68] sm:$0xff]   ;;  %v1140_v41 = vsub.s32 %v23_v39, %v25_v33 }
   0x6   :  { %857 = vmatprep.subr.bf16.mxu1 %v928_v5  ;;  %v936_v13 = vld [vmem:[%s1255_s1 + $0xd8] sm:$0xff]   ;;  %v940_v17 = vld [vmem:[%s1255_s1 + $0xe0] sm:$0xff]   ;;  %v944_v21 = vld [vmem:[%s1255_s1 + $0xe8] sm:$0xff]  }
   0x7   :  { %v937_v14 = vld [vmem:[%s1255_s1 + $0x18] sm:$0xff]   ;;  %v941_v18 = vld [vmem:[%s1255_s1 + $0x20] sm:$0xff]   ;;  %v945_v22 = vld [vmem:[%s1255_s1 + $0x28] sm:$0xff]  }
   0x8   :  { %836 = vmatpush3.bf16.msra.mxu0 %v929_v6  ;;  %v938_v15 = vld [vmem:[%s1255_s1 + $0x98] sm:$0xff]   ;;  %v942_v19 = vld [vmem:[%s1255_s1 + $0xa0] sm:$0xff]   ;;  %v946_v23 = vld [vmem:[%s1255_s1 + $0xa8] sm:$0xff]  }
   0x9   :  { %858 = vmatpush3.bf16.msra.mxu1 %v930_v7  ;;  %837 = vmatprep.subr.bf16.mxu0 %v931_v8  ;;  %v947_v24 = vld [vmem:[%s1255_s1 + $0x70] sm:$0xff]   ;;  %v951_v29 = vld [vmem:[%s1255_s1 + $0x78] sm:$0xff]   ;;  %v16_v34 = vld [vmem:[%s1254_s0] sm:$0xff] }
   0xa   :  { %859 = vmatprep.subr.bf16.mxu1 %v932_v9  ;;  %v948_v25 = vld [vmem:[%s1255_s1 + $0xf0] sm:$0xff]   ;;  %v952_v30 = vld [vmem:[%s1255_s1 + $0xf8] sm:$0xff]   ;;  %v956_v35 = vld [vmem:[%s1255_s1 + $0x140] sm:$0xff]   ;;  %v20_v40 = vcombine.high %v16_v34, %v16_v34  ;;  %v27_v42 = vrot.slane %v16_v34, %v1140_v41 }
   0xb   :  { %v949_v26 = vld [vmem:[%s1255_s1 + $0x30] sm:$0xff]   ;;  %v953_v31 = vld [vmem:[%s1255_s1 + $0x38] sm:$0xff]   ;;  %v957_v38 = vld [vmem:[%s1255_s1 + $0x1c0] sm:$0xff]  }
   0xc   :  { %838 = vmatpush3.bf16.msra.mxu0 %v933_v10  ;;  %v950_v27 = vld [vmem:[%s1255_s1 + $0xb0] sm:$0xff]   ;;  %v954_v32 = vld [vmem:[%s1255_s1 + $0xb8] sm:$0xff]   ;;  %v34_v43 = vrot.slane %v20_v40, %v1140_v41  ;;  %v35_v44 = vcombine.high %v27_v42, %v27_v42  ;;  %v958_v46 = vld [vmem:[%s1255_s1 + $0x100] sm:$0xff]   ;;  %v62_v47 = vpack.c.bf16 %v27_v42, %v27_v42 }
   0xd   :  { %860 = vmatpush3.bf16.msra.mxu1 %v934_v11  ;;  %839 = vmatprep.subr.bf16.mxu0 %v935_v12  ;;  %v959_v49 = vld [vmem:[%s1255_s1 + $0x180] sm:$0xff]   ;;  %v960_v52 = vld [vmem:[%s1255_s1 + $0x148] sm:$0xff]   ;;  %v964_v56 = vld [vmem:[%s1255_s1 + $0x150] sm:$0xff]  }
   0xe   :  { %861 = vmatprep.subr.bf16.mxu1 %v936_v13  ;;  %v36_v45 = vcombine.high %v34_v43, %v34_v43  ;;  %v64_v48 = vpack.c.bf16 %v34_v43, %v34_v43  ;;  %v63_v50 = vpack.c.bf16 %v35_v44, %v35_v44  ;;  %v961_v53 = vld [vmem:[%s1255_s1 + $0x1c8] sm:$0xff]   ;;  %v965_v57 = vld [vmem:[%s1255_s1 + $0x1d0] sm:$0xff]   ;;  %v968_v60 = vld [vmem:[%s1255_s1 + $0x158] sm:$0xff]  }
   0xf   :  { %v962_v54 = vld [vmem:[%s1255_s1 + $0x108] sm:$0xff]   ;;  %v966_v58 = vld [vmem:[%s1255_s1 + $0x110] sm:$0xff]   ;;  %v969_v61 = vld [vmem:[%s1255_s1 + $0x1d8] sm:$0xff]  }
  0x10   :  { %840 = vmatpush3.bf16.msra.mxu0 %v937_v14  ;;  %v65_v51 = vpack.c.bf16 %v36_v45, %v36_v45  ;;  %614 = vmatprep.mubr.bf16.mxu0 %v63_v50  ;;  %v963_v55 = vld [vmem:[%s1255_s1 + $0x188] sm:$0xff]   ;;  %v967_v59 = vld [vmem:[%s1255_s1 + $0x190] sm:$0xff]   ;;  %v970_v62 = vld [vmem:[%s1255_s1 + $0x118] sm:$0xff]  }
  0x11   :  { %862 = vmatpush3.bf16.msra.mxu1 %v938_v15  ;;  %841 = vmatprep.subr.bf16.mxu0 %v939_v16  ;;  %v971_v63 = vld [vmem:[%s1255_s1 + $0x198] sm:$0xff]   ;;  %v972_v0 = vld [vmem:[%s1255_s1 + $0x160] sm:$0xff]   ;;  %v976_v4 = vld [vmem:[%s1255_s1 + $0x168] sm:$0xff]  }
  0x12   :  { %863 = vmatprep.subr.bf16.mxu1 %v940_v17  ;;  %654 = vmatprep.mubr.bf16.mxu1 %v65_v51  ;;  %v973_v1 = vld [vmem:[%s1255_s1 + $0x1e0] sm:$0xff]   ;;  %v977_v5 = vld [vmem:[%s1255_s1 + $0x1e8] sm:$0xff]   ;;  %v980_v8 = vld [vmem:[%s1255_s1 + $0x170] sm:$0xff]  }
  0x13   :  { %v974_v2 = vld [vmem:[%s1255_s1 + $0x120] sm:$0xff]   ;;  %v978_v6 = vld [vmem:[%s1255_s1 + $0x128] sm:$0xff]   ;;  %v981_v9 = vld [vmem:[%s1255_s1 + $0x1f0] sm:$0xff]  }
  0x14   :  { %842 = vmatpush3.bf16.msra.mxu0 %v941_v18  ;;  %v975_v3 = vld [vmem:[%s1255_s1 + $0x1a0] sm:$0xff]   ;;  %v979_v7 = vld [vmem:[%s1255_s1 + $0x1a8] sm:$0xff]  }
  0x15   :  { %864 = vmatpush3.bf16.msra.mxu1 %v942_v19  ;;  %843 = vmatprep.subr.bf16.mxu0 %v943_v20  ;;  %v17_v10 = vld [vmem:[%s1254_s0 + $0x8] sm:$0xff] }
  0x16   :  { %865 = vmatprep.subr.bf16.mxu1 %v944_v21 }
  0x18   :  { %844 = vmatpush3.bf16.msra.mxu0 %v945_v22 }
  0x19   :  { %866 = vmatpush3.bf16.msra.mxu1 %v946_v23  ;;  %845 = vmatprep.subr.bf16.mxu0 %v947_v24 }
  0x1a   :  { %867 = vmatprep.subr.bf16.mxu1 %v948_v25 }
  0x1c   :  { %846 = vmatpush3.bf16.msra.mxu0 %v949_v26 }
  0x1d   :  { %868 = vmatpush3.bf16.msra.mxu1 %v950_v27  ;;  %847 = vmatprep.subr.bf16.mxu0 %v951_v29 }
  0x1e   :  { %869 = vmatprep.subr.bf16.mxu1 %v952_v30 }
  0x20   :  { %848 = vmatpush3.bf16.msra.mxu0 %v953_v31 }
  0x21   :  { %870 = vmatpush3.bf16.msra.mxu1 %v954_v32  ;;  %877 = vmatprep.subr.bf16.mxu0 %v956_v35 }
  0x22   :  { %899 = vmatprep.subr.bf16.mxu1 %v957_v38 }
  0x23   :  { %615 = vmatmul.mubr.bf16.vlgmr.msra.gmra.mrb[0].mxu0 %v62_v47 }
  0x24   :  { %655 = vmatmul.mubr.bf16.vlgmr.msra.gmra.mrb[0].mxu1 %v64_v48  ;;  %878 = vmatpush3.bf16.msra.mxu0 %v958_v46 }
  0x25   :  { %900 = vmatpush3.bf16.msra.mxu1 %v959_v49  ;;  %879 = vmatprep.subr.bf16.mxu0 %v960_v52 }
  0x26   :  { %901 = vmatprep.subr.bf16.mxu1 %v961_v53 }
  0x28   :  { %880 = vmatpush3.bf16.msra.mxu0 %v962_v54 }
  0x29   :  { %902 = vmatpush3.bf16.msra.mxu1 %v963_v55  ;;  %881 = vmatprep.subr.bf16.mxu0 %v964_v56 }
  0x2a   :  { %903 = vmatprep.subr.bf16.mxu1 %v965_v57 }
  0x2c   :  { %882 = vmatpush3.bf16.msra.mxu0 %v966_v58 }
  0x2d   :  { %904 = vmatpush3.bf16.msra.mxu1 %v967_v59  ;;  %883 = vmatprep.subr.bf16.mxu0 %v968_v60 }
  0x2e   :  { %905 = vmatprep.subr.bf16.mxu1 %v969_v61 }
  0x30   :  { %884 = vmatpush3.bf16.msra.mxu0 %v970_v62 }
  0x31   :  { %906 = vmatpush3.bf16.msra.mxu1 %v971_v63  ;;  %885 = vmatprep.subr.bf16.mxu0 %v972_v0 }
  0x32   :  { %907 = vmatprep.subr.bf16.mxu1 %v973_v1 }
  0x34   :  { %886 = vmatpush3.bf16.msra.mxu0 %v974_v2 }
  0x35   :  { %908 = vmatpush3.bf16.msra.mxu1 %v975_v3  ;;  %887 = vmatprep.subr.bf16.mxu0 %v976_v4 }
  0x36   :  { %909 = vmatprep.subr.bf16.mxu1 %v977_v5 }
  0x37   :  { %8 = vsyncpa [#allocation3], 0  ;;  %v44_v11 = vrot.slane %v17_v10, %v1140_v41  ;;  %v37_v12 = vcombine.high %v17_v10, %v17_v10  ;;  %v982_v13 = vld [vmem:[%s1255_s1 + $0x130] sm:$0xff]   ;;  %v984_v17 = vld [vmem:[%s1255_s1 + $0x178] sm:$0xff]   ;;  %s1014_s9 = smov [#allocation2]   ;;  %vm752_vm0 = vcmask 254976  }
  0x38   :  { %888 = vmatpush3.bf16.msra.mxu0 %v978_v6  ;;  %v983_v14 = vld [vmem:[%s1255_s1 + $0x1b0] sm:$0xff]   ;;  %v985_v18 = vld [vmem:[%s1255_s1 + $0x1f8] sm:$0xff]   ;;  %v832_v49 = vld [vmem:[%s1256_s2] ss:$0 sm:$0xff]  ;;  %s760_s10 = sshll.u32 %s1014_s9, 4  ;;  %s761_s10 = int_to_ptr.vmem [resolvable:$true] %s760_s10 }
  0x39   :  { %910 = vmatpush3.bf16.msra.mxu1 %v979_v7  ;;  %v52_v15 = vcombine.high %v44_v11, %v44_v11  ;;  %v51_v16 = vrot.slane %v37_v12, %v1140_v41  ;;  %889 = vmatprep.subr.bf16.mxu0 %v980_v8  ;;  %v986_v21 = vld [vmem:[%s1255_s1 + $0x138] sm:$0xff]   ;;  %v66_v24 = vpack.c.bf16 %v44_v11, %v44_v11  ;;  %s989_s11 = scalar_lea.vmem %s761_s10, 32  ;;  %p994_p1 = scmp.lt.s32.totalorder %s761_s10, %s761_s10 }
  0x3a   :  { %911 = vmatprep.subr.bf16.mxu1 %v981_v9  ;;  %v987_v22 = vld [vmem:[%s1255_s1 + $0x1b8] sm:$0xff]   ;;  %p990_p0 = scmp.ne.s32.totalorder %s761_s10, %s989_s11  ;;  %p995_p2 = scmp.lt.s32.totalorder %s989_s11, %s989_s11 }
  0x3b   :  { %v67_v19 = vpack.c.bf16 %v52_v15, %v52_v15  ;;  %v53_v20 = vcombine.high %v51_v16, %v51_v16  ;;  %v68_v25 = vpack.c.bf16 %v51_v16, %v51_v16 }
  0x3c   :  { %890 = vmatpush3.bf16.msra.mxu0 %v982_v13  ;;  %p996_p3 = por %p995_p2, %p994_p1 }
  0x3d   :  { %912 = vmatpush3.bf16.msra.mxu1 %v983_v14  ;;  %v69_v23 = vpack.c.bf16 %v53_v20, %v53_v20  ;;  %891 = vmatprep.subr.bf16.mxu0 %v984_v17 }
  0x3e   :  { %913 = vmatprep.subr.bf16.mxu1 %v985_v18  ;;  %694 = vmatprep.mubr.bf16.mxu0 %v67_v19  ;;  %p997_p4 = pnand %p996_p3, %p990_p0 }
  0x3f   :  { %734 = vmatprep.mubr.bf16.mxu1 %v69_v23 }
  0x40   :  { %892 = vmatpush3.bf16.msra.mxu0 %v986_v21 }
  0x41   :  { %914 = vmatpush3.bf16.msra.mxu1 %v987_v22 }
  0x43   :  { %695 = vmatmul.mubr.bf16.vlgmr.msra.gmra.mrb[4].mxu0 %v66_v24 }
  0x44   :  { %735 = vmatmul.mubr.bf16.vlgmr.msra.gmra.mrb[4].mxu1 %v68_v25 }
  0xf6   :  { %v849_v26 = vpop.f32.mrb[0].mxu0 }
  0xf7   :  { %v871_v27 = vpop.f32.mrb[0].mxu1  ;;  %v850_v28 = vpop.f32.mrb[1].mxu0 }
  0xf8   :  { %v872_v29 = vpop.f32.mrb[1].mxu1  ;;  %v851_v30 = vadd.f32 %v850_v28, %v849_v26  ;;  %v852_v32 = vpop.f32.mrb[2].mxu0 }
  0xf9   :  { %v873_v31 = vadd.f32 %v872_v29, %v871_v27  ;;  %v874_v33 = vpop.f32.mrb[2].mxu1  ;;  %v853_v34 = vpop.f32.mrb[3].mxu0 }
  0xfa   :  { %v875_v35 = vpop.f32.mrb[3].mxu1 }
  0xfb   :  { %v657_v36 = vadd.f32 %v873_v31, %v851_v30 }
 0x116   :  { %v893_v37 = vpop.f32.mrb[4].mxu0 }
 0x117   :  { %v915_v38 = vpop.f32.mrb[4].mxu1  ;;  %v894_v39 = vpop.f32.mrb[5].mxu0 }
 0x118   :  { %v916_v40 = vpop.f32.mrb[5].mxu1  ;;  %v895_v41 = vadd.f32 %v894_v39, %v893_v37  ;;  %v896_v43 = vpop.f32.mrb[6].mxu0 }
 0x119   :  { %v917_v42 = vadd.f32 %v916_v40, %v915_v38  ;;  %v918_v44 = vpop.f32.mrb[6].mxu1  ;;  %v897_v45 = vpop.f32.mrb[7].mxu0 }
 0x11a   :  { %v919_v46 = vpop.f32.mrb[7].mxu1  ;;  %v697_v47 = vadd.f32 %v895_v41, %v657_v36 }
 0x11c   :  { %v737_v48 = vadd.f32 %v917_v42, %v697_v47 }
 0x11e   :  { %v742_v50 = vmul.f32 0.03125, %v737_v48 }
 0x120   :  { %v750_v51 = vadd.f32 %v832_v49, %v742_v50 }
 0x122   :  { %v751_v52 = vmax.f32 %v750_v51, 0.0 }
 0x124   :  { %753 = vst.msk [vmem:[#allocation2] sm:$0x3] %vm752_vm0, %v751_v52 }
 0x125   :  { %1000 = shalt.err (!%p997_p4)
}
 0x126   :  { %s1001_s14 = scalar_lea.hbm %s1257_s3, 32 }
 0x127   :  { %p1002_p5 = scmp.ne.s32.totalorder %s1257_s3, %s1001_s14  ;;  %p1005_p6 = scmp.lt.u32.totalorder %s1001_s14, %s1257_s3 }
 0x129   :  { %p1007_p7 = pnand %p1005_p6, %p1002_p5 }
 0x12b   :  { %1010 = shalt.err (!%p1007_p7)
}
 0x12c   :  { %763 = dma.vmem_to_hbm [thread:$0]  %s761_s10, 32, %s1257_s3, [#allocation3]  }
 0x12d   :  { %1011 = dma.done.wait [#allocation3], 32  }
 0x12e   :  { %1012 = vsyncadd [#allocation3], 4294967264 }
 0x12f   :  { %767 = vsyncpa [#allocation3], 1 }

</bundles_post_ra>
